<compile_context>
chip_gen: v5e
topology: v5e:2x2
jax: 0.10.0
libtpu: 0.0.40
codegen_flags: <defaults>
</compile_context>

<pallas_src>
import functools

import jax
import jax.numpy as jnp
from jax.experimental import pallas as pl
from jax.experimental.pallas import tpu as pltpu

world_size = 1  # single-device: dist.all_reduce is a no-op


def _round_up(x, m):
    return (x + m - 1) // m * m


def _pick_tile(dim, target):
    """Largest multiple of 128 <= min(target, dim) that divides dim (dim % 128 == 0)."""
    t = max(128, (min(target, dim) // 128) * 128)
    while dim % t:
        t -= 128
    return t


def _default_tiles():
    """Per-generation tile targets (tm, tn, tk)."""
    try:
        kind = jax.devices()[0].device_kind.lower()
    except Exception:  # pragma: no cover - defensive
        kind = ""
    if "v6" in kind:
        # v6e: biggest output tile -> AI ~512 flop/byte (~16 MiB VMEM, limit raised below).
        return 1024, 1024, 512
    # v7x / v5e / unknown: AI ~341 flop/byte, ~9 MiB VMEM with f32 output.
    return 512, 1024, 512


def _make_kernel(has_bias, bf16_output):
    if has_bias:
        def kernel(x_ref, w_ref, b_ref, o_ref, acc_ref):
            # x: (tm, tk) bf16, w: (tk, tn) bf16 ([K, N] layout), b: (1, tn) f32,
            # o: (tm, tn), acc: (tm, tn) f32 scratch.
            k = pl.program_id(2)

            @pl.when(k == 0)
            def _init():
                acc_ref[...] = jnp.zeros_like(acc_ref)

            acc_ref[...] += jnp.dot(
                x_ref[...], w_ref[...], preferred_element_type=jnp.float32
            )

            @pl.when(k == pl.num_programs(2) - 1)
            def _epilogue():
                if bf16_output:
                    # Fused: add f32 bias to the f32 accumulator, single bf16 cast.
                    o_ref[...] = (acc_ref[...] + b_ref[...]).astype(jnp.bfloat16)
                else:
                    # torch matching: F.linear(bf16) -> bf16, then bf16 + f32 bias -> f32.
                    o_ref[...] = (
                        acc_ref[...].astype(jnp.bfloat16).astype(jnp.float32)
                        + b_ref[...]
                    )

        return kernel

    def kernel(x_ref, w_ref, o_ref, acc_ref):
        k = pl.program_id(2)

        @pl.when(k == 0)
        def _init():
            acc_ref[...] = jnp.zeros_like(acc_ref)

        acc_ref[...] += jnp.dot(
            x_ref[...], w_ref[...], preferred_element_type=jnp.float32
        )

        @pl.when(k == pl.num_programs(2) - 1)
        def _epilogue():
            o_ref[...] = acc_ref[...].astype(o_ref.dtype)

    return kernel


@functools.partial(
    jax.jit, static_argnames=("K", "N", "tm", "tn", "tk", "bf16_output")
)
def _row_parallel_linear_impl(x2d, wt, bias2d, *, K, N, tm, tn, tk, bf16_output):
    # x2d: (M, K) bf16; wt: (Kp, Np) bf16 pre-transposed (+padded); bias2d: (1, Np) f32 or None.
    M = x2d.shape[0]
    Kp, Np = wt.shape
    has_bias = bias2d is not None

    # Only pad activations along K when K is not a multiple of 128 (rare for DeepSeek dims).
    xp = x2d if Kp == K else jnp.pad(x2d, ((0, 0), (0, Kp - K)))

    out_dtype = jnp.bfloat16 if (bf16_output or not has_bias) else jnp.float32
    out_itemsize = jnp.dtype(out_dtype).itemsize

    grid = (pl.cdiv(M, tm), Np // tn, Kp // tk)  # ragged last M tile handled by Pallas

    in_specs = [
        pl.BlockSpec((tm, tk), lambda i, j, k: (i, k)),  # x tile
        pl.BlockSpec((tk, tn), lambda i, j, k: (k, j)),  # weight [K, N] tile
    ]
    args = [xp, wt]
    if has_bias:
        in_specs.append(pl.BlockSpec((1, tn), lambda i, j, k: (0, j)))  # bias tile
        args.append(bias2d)

    # Honest-ish traffic: x re-streamed once per N tile, W once per M tile.
    cost = pl.CostEstimate(
        flops=2 * M * N * K,
        transcendentals=0,
        bytes_accessed=(M * K * 2) * grid[1]
        + (Kp * Np * 2) * grid[0]
        + M * N * out_itemsize
        + (Np * 4 if has_bias else 0),
    )

    # Double-buffered inputs/outputs + f32 accumulator; raise the scoped-VMEM limit
    # explicitly when the config would not fit the smallest (v5e, 16 MiB) default.
    vmem_need = (
        ((tm * tk + tk * tn) * 2) * 2
        + tm * tn * out_itemsize * 2
        + tm * tn * 4
        + (tn * 4 * 2 if has_bias else 0)
    )
    vmem_limit = 48 * 1024 * 1024 if vmem_need > 12 * 1024 * 1024 else None

    out = pl.pallas_call(
        _make_kernel(has_bias, bf16_output),
        out_shape=jax.ShapeDtypeStruct((M, Np), out_dtype),
        grid_spec=pltpu.PrefetchScalarGridSpec(
            num_scalar_prefetch=0,
            grid=grid,
            in_specs=in_specs,
            out_specs=pl.BlockSpec((tm, tn), lambda i, j, k: (i, j)),
            scratch_shapes=[pltpu.VMEM((tm, tn), jnp.float32)],
        ),
        compiler_params=pltpu.CompilerParams(
            dimension_semantics=("parallel", "parallel", "arbitrary"),
            vmem_limit_bytes=vmem_limit,
        ),
        cost_estimate=cost,
    )(*args)

    return out if Np == N else out[:, :N]


class RowParallelLinear:
    """y = x @ W.T (+ bias); world_size == 1 so the all_reduce is a no-op.

    The weight is transposed to [K, N] (and padded to lane multiples if needed) ONCE
    at construction, so the per-call path runs only the Pallas GEMM kernel.
    """

    def __init__(self, weight, bias=None, *, tm=None, tn=None, tk=None):
        weight = jnp.asarray(weight)
        self.out_features, self.part_in_features = weight.shape
        N, K = self.out_features, self.part_in_features
        Np, Kp = _round_up(N, 128), _round_up(K, 128)

        wt = weight.T  # one-time [N, K] -> [K, N]: MXU-friendly, lane-dense output
        if (Kp, Np) != (K, N):
            wt = jnp.pad(wt, ((0, Kp - K), (0, Np - N)))
        self.wt = jax.device_put(wt)

        if bias is not None:
            b = jnp.asarray(bias, jnp.float32).reshape(1, N)
            if Np != N:
                b = jnp.pad(b, ((0, 0), (0, Np - N)))
            self.bias2d = jax.device_put(b)
        else:
            self.bias2d = None

        d_tm, d_tn, d_tk = _default_tiles()
        self.tm_target = tm or d_tm
        self.tn_target = tn or d_tn
        self.tk_target = tk or d_tk

    def __call__(self, x, *, bf16_output=False):
        K, N = self.part_in_features, self.out_features
        Kp, Np = self.wt.shape
        orig_shape = x.shape
        x2d = x.reshape(-1, K)
        M = x2d.shape[0]

        # M tile: >=16 (bf16 sublane packing), ragged last tile (no M padding).
        tm = max(16, min(self.tm_target, _round_up(M, 16)))
        tn_target, tk_target = self.tn_target, self.tk_target
        if -(-M // tm) == 1:
            # Decode-sized M: fatter K steps; keep >=2 N tiles so both v7x TCs get work.
            tk_target = max(tk_target, 1024)
            if 256 <= Np <= tn_target:
                tn_target = (Np // 2 // 128) * 128
        tn = _pick_tile(Np, tn_target)
        tk = _pick_tile(Kp, tk_target)

        out = _row_parallel_linear_impl(
            x2d, self.wt, self.bias2d,
            K=K, N=N, tm=tm, tn=tn, tk=tk, bf16_output=bf16_output,
        )
        return out.reshape(orig_shape[:-1] + (N,))


def row_parallel_linear(x, weight, bias=None, *, tm=None, tn=None, tk=None,
                        bf16_output=False):
    """One-shot convenience wrapper (re-prepares the weight each call; prefer the
    RowParallelLinear class for repeated calls so the transpose happens once)."""
    layer = RowParallelLinear(weight, bias, tm=tm, tn=tn, tk=tk)
    return layer(x, bf16_output=bf16_output)


def reference(x, weight, bias=None, bf16_output=False):
    y32 = jnp.dot(x.astype(jnp.float32), weight.astype(jnp.float32).T)
    if bf16_output and bias is not None:
        return (y32 + bias.astype(jnp.float32)).astype(jnp.bfloat16)
    y = y32.astype(jnp.bfloat16)
    if bias is None:
        return y
    return y.astype(jnp.float32) + bias.astype(jnp.float32)


if __name__ == "__main__":
    key = jax.random.PRNGKey(0)

    # --- Test 1: module config in_features=64, out_features=128, world_size=1 ---
    in_features, out_features = 64, 128
    part_in_features = in_features // world_size
    batch, seq = 2, 8

    k1, k2, k3, k4, k5, k6 = jax.random.split(key, 6)
    x = jax.random.normal(k1, (batch, seq, part_in_features), jnp.float32).astype(jnp.bfloat16)
    w = (jax.random.normal(k2, (out_features, part_in_features), jnp.float32) * 0.05
         ).astype(jnp.bfloat16)
    b = jax.random.normal(k3, (out_features,), jnp.float32) * 0.1

    layer = RowParallelLinear(w, b)
    y = jax.block_until_ready(layer(x))
    y_ref = reference(x, w, b)
    assert y.shape == (batch, seq, out_features)
    assert y.dtype == jnp.float32
    assert jnp.allclose(y, y_ref, atol=2e-2, rtol=2e-2), "mismatch vs reference (test 1)"

    # --- Test 2: multi-tile grid (M/N/K tiling + K accumulator) with a ragged M tile ---
    K2, N2 = 256, 256
    seq2 = 9  # M = 18 -> ragged last M tile with tm=16
    x2 = jax.random.normal(k4, (batch, seq2, K2), jnp.float32).astype(jnp.bfloat16)
    w2 = (jax.random.normal(k5, (N2, K2), jnp.float32) * 0.05).astype(jnp.bfloat16)
    b2 = jax.random.normal(k6, (N2,), jnp.float32) * 0.1

    y2 = jax.block_until_ready(row_parallel_linear(x2, w2, b2, tm=16, tn=128, tk=128))
    y2_ref = reference(x2, w2, b2)
    assert y2.shape == (batch, seq2, N2)
    assert jnp.allclose(y2, y2_ref, atol=2e-2, rtol=2e-2), "mismatch vs reference (test 2)"

    # --- Test 3: bias=None path (matches RowParallelLinear default bias=False) ---
    layer_nb = RowParallelLinear(w, None)
    y3 = jax.block_until_ready(layer_nb(x))
    y3_ref = reference(x, w, None)
    assert y3.dtype == jnp.bfloat16
    assert jnp.allclose(y3.astype(jnp.float32), y3_ref.astype(jnp.float32),
                        atol=2e-2, rtol=2e-2), "mismatch vs reference (test 3)"

    # --- Test 4: flag-gated bf16 output (bias fused into the f32 accumulator) ---
    y4 = jax.block_until_ready(layer(x, bf16_output=True))
    y4_ref = reference(x, w, b, bf16_output=True)
    assert y4.dtype == jnp.bfloat16
    assert jnp.allclose(y4.astype(jnp.float32), y4_ref.astype(jnp.float32),
                        atol=2e-2, rtol=2e-2), "mismatch vs reference (test 4)"

    print("KERNEL_OK")
</pallas_src>

<mosaic_0001>
module attributes {stable_mosaic.version = 11 : i64} {
  func.func @kernel(%arg0: i32, %arg1: i32, %arg2: i32, %arg3: memref<16x128xbf16, #tpu.memory_space<vmem>>, %arg4: memref<128x128xbf16, #tpu.memory_space<vmem>>, %arg5: memref<1x128xf32, #tpu.memory_space<vmem>>, %arg6: memref<16x128xf32, #tpu.memory_space<vmem>>, %arg7: memref<16x128xf32, #tpu.memory_space<vmem>>) attributes {dimension_semantics = [#tpu.dimension_semantics<parallel>, #tpu.dimension_semantics<parallel>, #tpu.dimension_semantics<arbitrary>], iteration_bounds = array<i64: 1, 1, 1>, scalar_prefetch = 0 : i64, scratch_operands = 1 : i64, tpu.core_type = #tpu.core_type<tc>, window_params = [{transform_indices = @transform_0, window_bounds = array<i64: 16, 128>}, {transform_indices = @transform_1, window_bounds = array<i64: 128, 128>}, {transform_indices = @transform_2, window_bounds = array<i64: 1, 128>}, {transform_indices = @transform_3, window_bounds = array<i64: 16, 128>}]} {
    %c0_i32 = arith.constant 0 : i32
    %0 = arith.cmpi eq, %arg2, %c0_i32 : i32
    %1 = arith.extui %0 : i1 to i32
    %c0_i32_0 = arith.constant 0 : i32
    %2 = arith.cmpi ne, %1, %c0_i32_0 : i32
    scf.if %2 {
      %cst_10 = arith.constant 0.000000e+00 : f32
      %12 = vector.broadcast %cst_10 : f32 to vector<16x128xf32>
      %c0_11 = arith.constant 0 : index
      %c0_12 = arith.constant 0 : index
      %13 = vector.load %arg7[%c0_11, %c0_12] : memref<16x128xf32, #tpu.memory_space<vmem>>, vector<16x128xf32>
      tpu.vector_store %arg7[%c0_11, %c0_12], %12 {strides = array<i32>} : memref<16x128xf32, #tpu.memory_space<vmem>>, vector<16x128xf32>,
    } else {
    }
    %c0 = arith.constant 0 : index
    %c0_1 = arith.constant 0 : index
    %3 = vector.load %arg7[%c0, %c0_1] : memref<16x128xf32, #tpu.memory_space<vmem>>, vector<16x128xf32>
    %c0_2 = arith.constant 0 : index
    %c0_3 = arith.constant 0 : index
    %4 = vector.load %arg3[%c0_2, %c0_3] : memref<16x128xbf16, #tpu.memory_space<vmem>>, vector<16x128xbf16>
    %c0_4 = arith.constant 0 : index
    %c0_5 = arith.constant 0 : index
    %5 = vector.load %arg4[%c0_4, %c0_5] : memref<128x128xbf16, #tpu.memory_space<vmem>>, vector<128x128xbf16>
    %cst = arith.constant dense<0.000000e+00> : vector<16x128xf32>
    %6 = tpu.matmul %4, %5, %cst {dimension_numbers = #tpu.dot_dimension_numbers<[1], [0], [0], [1], [0, 0, 1, 1], [], []>} : vector<16x128xbf16>, vector<128x128xbf16>, vector<16x128xf32> -> vector<16x128xf32>
    %7 = arith.addf %3, %6 : vector<16x128xf32>
    %c0_6 = arith.constant 0 : index
    %c0_7 = arith.constant 0 : index
    %8 = vector.load %arg7[%c0_6, %c0_7] : memref<16x128xf32, #tpu.memory_space<vmem>>, vector<16x128xf32>
    tpu.vector_store %arg7[%c0_6, %c0_7], %7 {strides = array<i32>} : memref<16x128xf32, #tpu.memory_space<vmem>>, vector<16x128xf32>,
    %c0_i32_8 = arith.constant 0 : i32
    %9 = arith.cmpi eq, %arg2, %c0_i32_8 : i32
    %10 = arith.extui %9 : i1 to i32
    %c0_i32_9 = arith.constant 0 : i32
    %11 = arith.cmpi ne, %10, %c0_i32_9 : i32
    scf.if %11 {
      %c0_10 = arith.constant 0 : index
      %c0_11 = arith.constant 0 : index
      %12 = vector.load %arg7[%c0_10, %c0_11] : memref<16x128xf32, #tpu.memory_space<vmem>>, vector<16x128xf32>
      %13 = arith.truncf %12 : vector<16x128xf32> to vector<16x128xbf16>
      %14 = arith.extf %13 : vector<16x128xbf16> to vector<16x128xf32>
      %c0_12 = arith.constant 0 : index
      %c0_13 = arith.constant 0 : index
      %15 = vector.load %arg5[%c0_12, %c0_13] : memref<1x128xf32, #tpu.memory_space<vmem>>, vector<1x128xf32>
      %16 = vector.broadcast %15 : vector<1x128xf32> to vector<16x128xf32>
      %17 = arith.addf %14, %16 : vector<16x128xf32>
      %c0_14 = arith.constant 0 : index
      %c0_15 = arith.constant 0 : index
      %18 = vector.load %arg6[%c0_14, %c0_15] : memref<16x128xf32, #tpu.memory_space<vmem>>, vector<16x128xf32>
      tpu.vector_store %arg6[%c0_14, %c0_15], %17 {strides = array<i32>} : memref<16x128xf32, #tpu.memory_space<vmem>>, vector<16x128xf32>,
    } else {
    }
    return
  }
  func.func @transform_0(%arg0: i32, %arg1: i32, %arg2: i32) -> (i32, i32) {
    %c0_i32 = arith.constant 0 : i32
    return %arg0, %arg2 : i32, i32
  }
  func.func @transform_1(%arg0: i32, %arg1: i32, %arg2: i32) -> (i32, i32) {
    %c0_i32 = arith.constant 0 : i32
    return %arg2, %arg1 : i32, i32
  }
  func.func @transform_2(%arg0: i32, %arg1: i32, %arg2: i32) -> (i32, i32) {
    %c0_i32 = arith.constant 0 : i32
    %c0_i32_0 = arith.constant 0 : i32
    return %c0_i32, %arg1 : i32, i32
  }
  func.func @transform_3(%arg0: i32, %arg1: i32, %arg2: i32) -> (i32, i32) {
    %c0_i32 = arith.constant 0 : i32
    return %arg0, %arg1 : i32, i32
  }
}

</mosaic_0001>

<bundles_post_ra>
// kernel: _row_parallel_linear_impl.1
= control target key start
LH: loop header
LB: loop body
LE: loop exit
PB: predicated region body
PF: predicated region fallthrough
CT: control target
= control target key end

     0   :  { %8 = vsyncpa [#allocation4], 0  ;;  %s307_s0 = inlined_call_operand.vmem [shape: bf16[16,128], index: 0, kind: input, shape index: {}]   ;;  %s308_s1 = inlined_call_operand.hbm [shape: bf16[128,128], index: 1, kind: input, shape index: {}]   ;;  %s309_s2 = inlined_call_operand.vmem [shape: f32[1,128], index: 2, kind: input, shape index: {}]   ;;  %s310_s3 = inlined_call_operand.hbm [shape: f32[16,128], index: 3, kind: output, shape index: {}]  }
   0x1   :  { %9 = vsyncpa [#allocation5], 0  ;;  %s16_s14 = sshll.u32 %s308_s1, 4  ;;  %s269_s15 = smov [#allocation3]   ;;  %s17_s14 = int_to_ptr.hbm [resolvable:$true] %s16_s14 }
   0x2   :  { %s18_s16 = sshll.u32 %s269_s15, 4  ;;  %s270_s17 = smov 64   ;;  %s19_s16 = int_to_ptr.vmem [resolvable:$true] %s18_s16 }
   0x3   :  { %s271_s18 = smov 4  }
   0x4   :  { %24 = dma.hbm_to_vmem [thread:$0]  %s17_s14, 1024, %s19_s16, [#allocation4], %s270_s17, %s270_s17, %s271_s18  }
   0x5   :  { %265 = dma.done.wait [#allocation4], 1024  }
   0x6   :  { %266 = vsyncadd [#allocation4], 4294966272  ;;  %v209_v0 = vld [vmem:[#allocation3 + $0x38] sm:$0xff]  ;;  %v208_v1 = vld [vmem:[#allocation3 + $0x30] sm:$0xff]  ;;  %s272_s22 = smov [#allocation6]   ;;  %s152_s26 = sshll.u32 %s310_s3, 4  ;;  %s153_s26 = int_to_ptr.hbm [resolvable:$true] %s152_s26 }
   0x7   :  { %111 = vmatpush.bf16.msra.mxu0 %v209_v0  ;;  %v207_v2 = vld [vmem:[#allocation3 + $0x28] sm:$0xff]  ;;  %v206_v3 = vld [vmem:[#allocation3 + $0x20] sm:$0xff]  ;;  %v205_v4 = vld [vmem:[#allocation3 + $0x18] sm:$0xff]  ;;  %s150_s23 = sshll.u32 %s272_s22, 4  ;;  %s274_s27 = smov 8   ;;  %s151_s23 = int_to_ptr.vmem [resolvable:$true] %s150_s23 }
   0x8   :  { %v204_v5 = vld [vmem:[#allocation3 + $0x10] sm:$0xff]  ;;  %v203_v6 = vld [vmem:[#allocation3 + $0x8] sm:$0xff]  ;;  %v202_v7 = vld [vmem:[#allocation3] sm:$0xff] }
   0x9   :  { %v201_v8 = vld [vmem:[%s307_s0] sm:$0xff]  ;;  %s273_s0 = smov 128  }
   0xa   :  { %v216_v11 = vld [vmem:[%s309_s2] ss:$0 sm:$0xff] }
   0xb   :  { %112 = vmatpush.bf16.msra.mxu0 %v208_v1 }
   0xf   :  { %113 = vmatpush.bf16.msra.mxu0 %v207_v2 }
  0x13   :  { %114 = vmatpush.bf16.msra.mxu0 %v206_v3 }
  0x17   :  { %115 = vmatpush.bf16.msra.mxu0 %v205_v4 }
  0x1b   :  { %116 = vmatpush.bf16.msra.mxu0 %v204_v5 }
  0x1f   :  { %117 = vmatpush.bf16.msra.mxu0 %v203_v6 }
  0x23   :  { %118 = vmatpush.bf16.msra.mxu0 %v202_v7 }
  0x26   :  { %119 = vmatmul.bf16.vlgmr.msra.gmra.mxu0 %v201_v8 }
  0xa3   :  { %v120_v9 = vpop.f32.mrf.mxu0 }
  0xa4   :  { %v134_v10 = vpack.c.bf16 %v120_v9, %v120_v9 }
  0xa6   :  { %v136_v12 = vunpack.c.l.bf16 %v134_v10 }
  0xa8   :  { %v142_v13 = vadd.f32 %v216_v11, %v136_v12 }
  0xaa   :  { %144 = vst [vmem:[#allocation6] sm:$0xff] %v142_v13 }
  0xab   :  { %v122_v14 = vpop.f32.mrf.mxu0 }
  0xac   :  { %v135_v15 = vpack.c.bf16 %v122_v14, %v122_v14 }
  0xae   :  { %v137_v16 = vunpack.c.l.bf16 %v135_v15 }
  0xb0   :  { %v143_v17 = vadd.f32 %v216_v11, %v137_v16 }
  0xb2   :  { %145 = vst [vmem:[#allocation6 + $0x8] sm:$0xff] %v143_v17 }
  0xb3   :  { %158 = dma.vmem_to_hbm [thread:$0]  %s151_s23, 256, %s153_s26, [#allocation5], %s273_s0, %s273_s0, %s274_s27  }
  0xb4   :  { %267 = dma.done.wait [#allocation5], 256  }
  0xb5   :  { %268 = vsyncadd [#allocation5], 4294967040 }
  0xb6   :  { %163 = vsyncpa [#allocation4], 1 }
  0xb7   :  { %164 = vsyncpa [#allocation5], 1 }

</bundles_post_ra>
